<compile_context>
chip_gen: v6e
topology: v6e:2x2x1
jax: 0.10.0
libtpu: 0.0.40
codegen_flags: <defaults>
</compile_context>

<pallas_src>
import functools

import jax
import jax.numpy as jnp
from jax.experimental import pallas as pl
from jax.experimental.pallas import tpu as pltpu

F32 = jnp.float32
BF16 = jnp.bfloat16


# ----------------------------------------------------------------------------
# Shared math helpers (used by both the Pallas kernel bodies and the reference).
# ----------------------------------------------------------------------------
def _bdot(a, b):
    """Matmul with bf16 operands on the MXU, f32 accumulation."""
    return jnp.dot(a.astype(BF16), b.astype(BF16), preferred_element_type=F32)


def _encoder(x, W0, b0, W1, b1):
    """MLP(input_dim, [hidden], hidden) followed by the forward()'s ReLU."""
    h = jnp.maximum(_bdot(x, W0) + b0, 0.0)
    h = _bdot(h, W1) + b1
    return jnp.maximum(h, 0.0)


def _gat_tile(adj_t, r_t, l_all, att, bias, *, hidden_dim, num_heads, z_dtype,
              recip):
    """GATv2 attention for one tile of target rows against all source nodes.

    adj_t: [TI, N] 0/1 mask, r_t: [TI, H*Hd] target transforms for the tile,
    l_all: [N, H*Hd] source transforms for all nodes, att: [H, 1, Hd],
    bias: [1, H*Hd].  Returns relu(concat_heads + bias): [TI, H*Hd] f32.
    """
    neg_mask = (adj_t.astype(F32) - 1.0) * 1e30        # 0 on edges, -1e30 off-edge
    heads = []
    for k in range(num_heads):
        sl = slice(k * hidden_dim, (k + 1) * hidden_dim)
        Lh = l_all[:, sl]                              # [N, Hd]  f32
        Rh = r_t[:, sl]                                # [TI, Hd] f32
        # z[i, j, :] = L[j] + R[i]; bf16 on v6e/v7x (bf16 VALU), f32 on v5e.
        z = Rh[:, None, :].astype(z_dtype) + Lh[None, :, :].astype(z_dtype)
        z = jnp.maximum(z, 0.2 * z)                    # leaky_relu(0.2), 2 VPU ops
        a_row = att[k].astype(z_dtype)                 # [1, Hd]
        # score contraction: VPU multiply + XLU lane reduce (f32 accumulate).
        e = jnp.sum((z * a_row[None]).astype(F32), axis=-1)     # [TI, N]
        # masked softmax over source nodes j: additive mask BEFORE exp.
        em = e + neg_mask
        rowmax = jnp.max(em, axis=1, keepdims=True)
        p = jnp.exp(em - rowmax)                       # off-edges underflow to 0
        alpha = p * recip(jnp.sum(p, axis=1, keepdims=True))
        heads.append(jnp.dot(alpha.astype(BF16), Lh.astype(BF16),
                             preferred_element_type=F32))       # [TI, Hd]
    g = jnp.concatenate(heads, axis=1) + bias          # single lane-dense slab
    return jnp.maximum(g, 0.0)


def _dueling(x1, x2, x3, WQV0, bQV0, WQV1, bQV1, hidden_dim, hhd):
    """Fused dueling head: one [final, 2*hidden] matmul (row-blocked, no concat)
    + one block-diagonal [2*hidden, 3] matmul; split q/v after."""
    pre = (_bdot(x1, WQV0[:hidden_dim]) +
           _bdot(x2, WQV0[hidden_dim:hidden_dim + hhd]) +
           _bdot(x3, WQV0[hidden_dim + hhd:]) + bQV0)
    hid = jnp.maximum(pre, 0.0)                        # [B, 2*hidden]
    qv = _bdot(hid, WQV1) + bQV1                       # [B, 3]
    q, v = qv[:, :2], qv[:, 2:3]
    return q - jnp.mean(q, axis=1, keepdims=True) + v


# ----------------------------------------------------------------------------
# Pallas kernel bodies.
# ----------------------------------------------------------------------------
def encode_kernel(x_ref, w0, b0, w1, b1, wl1, bl1, wr1, br1,
                  h_ref, l1_ref, r1_ref):
    """Encoder MLP + ReLU, plus the fused lin_l/lin_r transforms for conv1."""
    h = _encoder(x_ref[...], w0[...], b0[...], w1[...], b1[...])
    h_ref[...] = h
    l1_ref[...] = _bdot(h, wl1[...]) + bl1[...]
    r1_ref[...] = _bdot(h, wr1[...]) + br1[...]


def gat1_kernel(adj_ref, r_ref, l_ref, att_ref, bias_ref,
                wl2, bl2, wr2, br2,
                g_ref, l2_ref, r2_ref, *, hidden_dim, num_heads, z_dtype):
    """Row-tiled GATv2 layer 1 + fused lin_l/lin_r transforms for conv2."""
    recip = lambda d: pl.reciprocal(d, approx=True)    # EUP slot (otherwise idle)
    g = _gat_tile(adj_ref[...], r_ref[...], l_ref[...], att_ref[...],
                  bias_ref[...], hidden_dim=hidden_dim, num_heads=num_heads,
                  z_dtype=z_dtype, recip=recip)
    g_ref[...] = g
    l2_ref[...] = _bdot(g, wl2[...]) + bl2[...]
    r2_ref[...] = _bdot(g, wr2[...]) + br2[...]


def gat2_kernel(adj_ref, r_ref, l_ref, att_ref, bias_ref, g_ref,
                *, hidden_dim, num_heads, z_dtype):
    """Row-tiled GATv2 layer 2."""
    recip = lambda d: pl.reciprocal(d, approx=True)
    g_ref[...] = _gat_tile(adj_ref[...], r_ref[...], l_ref[...], att_ref[...],
                           bias_ref[...], hidden_dim=hidden_dim,
                           num_heads=num_heads, z_dtype=z_dtype, recip=recip)


def head_kernel(sel_ref, h_ref, g1_ref, g2_ref, wqv0, bqv0, wqv1, bqv1,
                out_ref, *, hidden_dim, hhd):
    """Per-graph index-node gather (one-hot matmul) + fused dueling Q/V head."""
    sel = sel_ref[...]
    x1 = _bdot(sel, h_ref[...])                        # [B, hidden]
    x2 = _bdot(sel, g1_ref[...])                       # [B, H*Hd]
    x3 = _bdot(sel, g2_ref[...])                       # [B, H*Hd]
    out_ref[...] = _dueling(x1, x2, x3, wqv0[...], bqv0[...], wqv1[...],
                            bqv1[...], hidden_dim, hhd)


# ----------------------------------------------------------------------------
# Wrapper: per-generation precision / VMEM choices + the 4-call pipeline.
# ----------------------------------------------------------------------------
def _device_kind():
    return jax.devices()[0].device_kind.lower()


def _use_bf16_z():
    # bf16 VALU exists on v6e / v7x; keep z in f32 on older generations.
    kind = _device_kind()
    return not any(t in kind for t in ("v2", "v3", "v4", "v5"))


def _vmem_limit_bytes():
    kind = _device_kind()
    if "v7" in kind or "7x" in kind:
        return 48 * 1024 * 1024      # 64 MiB physical: leave double-buffer slack
    if "v5" in kind or "v6" in kind:
        return 100 * 1024 * 1024     # 128 MiB physical: room for bigger row tiles
    return 32 * 1024 * 1024


def _resident(a):
    nd = a.ndim
    return pl.BlockSpec(a.shape, lambda *gi: (0,) * nd)


def ldgn_forward(x, adj, sel, params, *, hidden_dim, num_heads, row_tile=8,
                 z_dtype=None):
    (W0, b0, W1, b1, Wl1, bl1, Wr1, br1, att1, bias1,
     Wl2, bl2, Wr2, br2, att2, bias2, WQV0, bQV0, WQV1, bQV1) = params
    N, _ = x.shape
    B = sel.shape[0]
    hhd = hidden_dim * num_heads
    TI = row_tile
    assert N % TI == 0 and TI % 8 == 0
    n_tiles = N // TI
    if z_dtype is None:
        z_dtype = BF16 if _use_bf16_z() else F32

    grid_cp = pltpu.CompilerParams(dimension_semantics=("parallel",),
                                   vmem_limit_bytes=_vmem_limit_bytes())
    flat_cp = pltpu.CompilerParams(vmem_limit_bytes=_vmem_limit_bytes())

    def rows(width):
        return pl.BlockSpec((TI, width), lambda i: (i, 0))

    # 1) encoder + fused lin_l/lin_r transforms for conv1 (row-tiled, parallel).
    h, l1, r1 = pl.pallas_call(
        encode_kernel,
        grid=(n_tiles,),
        in_specs=[rows(x.shape[1])] + [_resident(w) for w in
                                       (W0, b0, W1, b1, Wl1, bl1, Wr1, br1)],
        out_specs=(rows(hidden_dim), rows(hhd), rows(hhd)),
        out_shape=(jax.ShapeDtypeStruct((N, hidden_dim), F32),
                   jax.ShapeDtypeStruct((N, hhd), F32),
                   jax.ShapeDtypeStruct((N, hhd), F32)),
        compiler_params=grid_cp,
    )(x, W0, b0, W1, b1, Wl1, bl1, Wr1, br1)

    # 2) GATv2 layer 1 (adj row tiles, L1 resident) + conv2 transforms.
    k1 = functools.partial(gat1_kernel, hidden_dim=hidden_dim,
                           num_heads=num_heads, z_dtype=z_dtype)
    g1, l2, r2 = pl.pallas_call(
        k1,
        grid=(n_tiles,),
        in_specs=[rows(N), rows(hhd), _resident(l1), _resident(att1),
                  _resident(bias1), _resident(Wl2), _resident(bl2),
                  _resident(Wr2), _resident(br2)],
        out_specs=(rows(hhd), rows(hhd), rows(hhd)),
        out_shape=(jax.ShapeDtypeStruct((N, hhd), F32),) * 3,
        compiler_params=grid_cp,
    )(adj, r1, l1, att1, bias1, Wl2, bl2, Wr2, br2)

    # 3) GATv2 layer 2 (adj row tiles, L2 resident).
    k2 = functools.partial(gat2_kernel, hidden_dim=hidden_dim,
                           num_heads=num_heads, z_dtype=z_dtype)
    g2 = pl.pallas_call(
        k2,
        grid=(n_tiles,),
        in_specs=[rows(N), rows(hhd), _resident(l2), _resident(att2),
                  _resident(bias2)],
        out_specs=rows(hhd),
        out_shape=jax.ShapeDtypeStruct((N, hhd), F32),
        compiler_params=grid_cp,
    )(adj, r2, l2, att2, bias2)

    # 4) index-node gather + fused dueling head (tiny, gridless).
    kh = functools.partial(head_kernel, hidden_dim=hidden_dim, hhd=hhd)
    return pl.pallas_call(
        kh,
        in_specs=[pl.BlockSpec(memory_space=pltpu.MemorySpace.VMEM)] * 8,
        out_specs=pl.BlockSpec(memory_space=pltpu.MemorySpace.VMEM),
        out_shape=jax.ShapeDtypeStruct((B, 2), F32),
        compiler_params=flat_cp,
    )(sel, h, g1, g2, WQV0, bQV0, WQV1, bQV1)


# ----------------------------------------------------------------------------
# Pure-JAX reference of the identical math (exact divide).
# ----------------------------------------------------------------------------
def ldgn_reference(x, adj, sel, params, *, hidden_dim, num_heads, z_dtype=F32):
    (W0, b0, W1, b1, Wl1, bl1, Wr1, br1, att1, bias1,
     Wl2, bl2, Wr2, br2, att2, bias2, WQV0, bQV0, WQV1, bQV1) = params
    hhd = hidden_dim * num_heads
    recip = lambda d: 1.0 / d
    h = _encoder(x, W0, b0, W1, b1)
    l1 = _bdot(h, Wl1) + bl1
    r1 = _bdot(h, Wr1) + br1
    g1 = _gat_tile(adj, r1, l1, att1, bias1, hidden_dim=hidden_dim,
                   num_heads=num_heads, z_dtype=z_dtype, recip=recip)
    l2 = _bdot(g1, Wl2) + bl2
    r2 = _bdot(g1, Wr2) + br2
    g2 = _gat_tile(adj, r2, l2, att2, bias2, hidden_dim=hidden_dim,
                   num_heads=num_heads, z_dtype=z_dtype, recip=recip)
    x1, x2, x3 = _bdot(sel, h), _bdot(sel, g1), _bdot(sel, g2)
    return _dueling(x1, x2, x3, WQV0, bQV0, WQV1, bQV1, hidden_dim, hhd)


# ----------------------------------------------------------------------------
# Deterministic parameter / input construction.
# ----------------------------------------------------------------------------
def init_params(key, input_dim, hidden_dim, num_heads):
    HHd = hidden_dim * num_heads
    final = hidden_dim + 2 * HHd
    ks = iter(jax.random.split(key, 32))

    def lin(fin, fout):
        w = jax.random.normal(next(ks), (fin, fout), F32) * (fin ** -0.5)
        b = 0.1 * jax.random.normal(next(ks), (1, fout), F32)
        return w, b

    def gat(fin):
        # head-fused lin_l / lin_r weights: [fin, H*Hd] (head k in cols k*Hd:(k+1)*Hd)
        Wl = jax.random.normal(next(ks), (fin, HHd), F32) * (fin ** -0.5)
        bl = 0.1 * jax.random.normal(next(ks), (1, HHd), F32)
        Wr = jax.random.normal(next(ks), (fin, HHd), F32) * (fin ** -0.5)
        br = 0.1 * jax.random.normal(next(ks), (1, HHd), F32)
        att = jax.random.normal(next(ks), (num_heads, 1, hidden_dim), F32) * (hidden_dim ** -0.5)
        bias = 0.1 * jax.random.normal(next(ks), (1, HHd), F32)
        return Wl, bl, Wr, br, att, bias

    W0, b0 = lin(input_dim, hidden_dim)              # encoder layer 0
    W1, b1 = lin(hidden_dim, hidden_dim)             # encoder layer 1
    Wl1, bl1, Wr1, br1, att1, bias1 = gat(hidden_dim)   # conv1
    Wl2, bl2, Wr2, br2, att2, bias2 = gat(HHd)          # conv2
    WQ0, bQ0 = lin(final, hidden_dim)                # Q MLP hidden
    WQ1, bQ1 = lin(hidden_dim, 2)                    # Q MLP out (q_output_dim=2)
    WV0, bV0 = lin(final, hidden_dim)                # V MLP hidden
    WV1, bV1 = lin(hidden_dim, 1)                    # V MLP out (v_output_dim=1)

    # Fuse the dueling heads: WQ0|WV0 along output lanes; WQ1/WV1 block-diagonal.
    WQV0 = jnp.concatenate([WQ0, WV0], axis=1)                 # [final, 2*hidden]
    bQV0 = jnp.concatenate([bQ0, bV0], axis=1)                 # [1, 2*hidden]
    WQV1 = jnp.zeros((2 * hidden_dim, 3), F32)
    WQV1 = WQV1.at[:hidden_dim, :2].set(WQ1).at[hidden_dim:, 2:].set(WV1)
    bQV1 = jnp.concatenate([bQ1, bV1], axis=1)                 # [1, 3]

    return [W0, b0, W1, b1,
            Wl1, bl1, Wr1, br1, att1, bias1,
            Wl2, bl2, Wr2, br2, att2, bias2,
            WQV0, bQV0, WQV1, bQV1]


def prepare_params(params):
    """Cast MXU weight matrices to bf16 (halves DMA/VMEM); keep biases and
    attention vectors (softmax path) in f32."""
    out = list(params)
    for i in (0, 2, 4, 6, 10, 12, 16, 18):
        out[i] = out[i].astype(BF16)
    return out


def build_graph(num_graphs, nodes_per_graph):
    """Block-diagonal ring graphs + self-loops; adj[i, j] = edge j -> i."""
    N = num_graphs * nodes_per_graph
    adj = [[0.0] * N for _ in range(N)]
    for g in range(num_graphs):
        for k in range(nodes_per_graph):
            i = g * nodes_per_graph + k
            adj[i][i] = 1.0                                                # self loop
            adj[i][g * nodes_per_graph + (k + 1) % nodes_per_graph] = 1.0  # ring nbrs
            adj[i][g * nodes_per_graph + (k - 1) % nodes_per_graph] = 1.0
    # "index" node per graph: node 0 of each graph -> one-hot selection matrix.
    sel = [[0.0] * N for _ in range(num_graphs)]
    for g in range(num_graphs):
        sel[g][g * nodes_per_graph] = 1.0
    return jnp.array(adj, F32), jnp.array(sel, F32)


if __name__ == "__main__":
    input_dim, hidden_dim, num_heads = 8, 16, 2
    num_graphs, nodes_per_graph = 4, 4
    N = num_graphs * nodes_per_graph

    key = jax.random.PRNGKey(0)
    kx, kp = jax.random.split(key)
    x = jax.random.normal(kx, (N, input_dim), F32)
    adj, sel = build_graph(num_graphs, nodes_per_graph)
    sel = sel.astype(BF16)       # one-hot: exact in bf16 (adj stays f32 so the
                                 # (8, N) row tiles are sublane-aligned at TI=8)
    params = prepare_params(init_params(kp, input_dim, hidden_dim, num_heads))

    z_dtype = BF16 if _use_bf16_z() else F32
    out = jax.block_until_ready(
        ldgn_forward(x, adj, sel, params, hidden_dim=hidden_dim,
                     num_heads=num_heads, row_tile=8, z_dtype=z_dtype))
    ref = ldgn_reference(x, adj, sel, params, hidden_dim=hidden_dim,
                         num_heads=num_heads, z_dtype=z_dtype)

    assert out.shape == (num_graphs, 2)
    # Tolerance: kernel uses the EUP approx reciprocal; reference divides exactly.
    assert jnp.allclose(out, ref, rtol=2e-2, atol=2e-2), (out, ref)
    print("KERNEL_OK")
</pallas_src>

<mosaic_0001>
module attributes {stable_mosaic.version = 11 : i64} {
  func.func @encode_kernel(%arg0: i32, %arg1: memref<8x8xf32, #tpu.memory_space<vmem>>, %arg2: memref<8x16xbf16, #tpu.memory_space<vmem>>, %arg3: memref<1x16xf32, #tpu.memory_space<vmem>>, %arg4: memref<16x16xbf16, #tpu.memory_space<vmem>>, %arg5: memref<1x16xf32, #tpu.memory_space<vmem>>, %arg6: memref<16x32xbf16, #tpu.memory_space<vmem>>, %arg7: memref<1x32xf32, #tpu.memory_space<vmem>>, %arg8: memref<16x32xbf16, #tpu.memory_space<vmem>>, %arg9: memref<1x32xf32, #tpu.memory_space<vmem>>, %arg10: memref<8x16xf32, #tpu.memory_space<vmem>>, %arg11: memref<8x32xf32, #tpu.memory_space<vmem>>, %arg12: memref<8x32xf32, #tpu.memory_space<vmem>>) attributes {dimension_semantics = [#tpu.dimension_semantics<parallel>], iteration_bounds = array<i64: 2>, scalar_prefetch = 0 : i64, scratch_operands = 0 : i64, tpu.core_type = #tpu.core_type<tc>, window_params = [{transform_indices = @transform_0, window_bounds = array<i64: 8, 8>}, {pipeline_mode = #tpu.pipeline_mode<synchronous>, transform_indices = @transform_1, window_bounds = array<i64: 8, 16>}, {pipeline_mode = #tpu.pipeline_mode<synchronous>, transform_indices = @transform_2, window_bounds = array<i64: 1, 16>}, {pipeline_mode = #tpu.pipeline_mode<synchronous>, transform_indices = @transform_3, window_bounds = array<i64: 16, 16>}, {pipeline_mode = #tpu.pipeline_mode<synchronous>, transform_indices = @transform_4, window_bounds = array<i64: 1, 16>}, {pipeline_mode = #tpu.pipeline_mode<synchronous>, transform_indices = @transform_5, window_bounds = array<i64: 16, 32>}, {pipeline_mode = #tpu.pipeline_mode<synchronous>, transform_indices = @transform_6, window_bounds = array<i64: 1, 32>}, {pipeline_mode = #tpu.pipeline_mode<synchronous>, transform_indices = @transform_7, window_bounds = array<i64: 16, 32>}, {pipeline_mode = #tpu.pipeline_mode<synchronous>, transform_indices = @transform_8, window_bounds = array<i64: 1, 32>}, {transform_indices = @transform_9, window_bounds = array<i64: 8, 16>}, {transform_indices = @transform_10, window_bounds = array<i64: 8, 32>}, {transform_indices = @transform_11, window_bounds = array<i64: 8, 32>}]} {
    %c0 = arith.constant 0 : index
    %c0_0 = arith.constant 0 : index
    %0 = vector.load %arg1[%c0, %c0_0] : memref<8x8xf32, #tpu.memory_space<vmem>>, vector<8x8xf32>
    %c0_1 = arith.constant 0 : index
    %c0_2 = arith.constant 0 : index
    %1 = vector.load %arg2[%c0_1, %c0_2] : memref<8x16xbf16, #tpu.memory_space<vmem>>, vector<8x16xbf16>
    %c0_3 = arith.constant 0 : index
    %c0_4 = arith.constant 0 : index
    %2 = vector.load %arg3[%c0_3, %c0_4] : memref<1x16xf32, #tpu.memory_space<vmem>>, vector<1x16xf32>
    %c0_5 = arith.constant 0 : index
    %c0_6 = arith.constant 0 : index
    %3 = vector.load %arg4[%c0_5, %c0_6] : memref<16x16xbf16, #tpu.memory_space<vmem>>, vector<16x16xbf16>
    %c0_7 = arith.constant 0 : index
    %c0_8 = arith.constant 0 : index
    %4 = vector.load %arg5[%c0_7, %c0_8] : memref<1x16xf32, #tpu.memory_space<vmem>>, vector<1x16xf32>
    %5 = arith.truncf %0 : vector<8x8xf32> to vector<8x8xbf16>
    %cst = arith.constant dense<0.000000e+00> : vector<8x16xf32>
    %6 = tpu.matmul %5, %1, %cst {dimension_numbers = #tpu.dot_dimension_numbers<[1], [0], [0], [1], [0, 0, 1, 1], [], []>} : vector<8x8xbf16>, vector<8x16xbf16>, vector<8x16xf32> -> vector<8x16xf32>
    %7 = vector.broadcast %2 : vector<1x16xf32> to vector<8x16xf32>
    %8 = arith.addf %6, %7 : vector<8x16xf32>
    %cst_9 = arith.constant 0.000000e+00 : f32
    %9 = vector.broadcast %cst_9 : f32 to vector<8x16xf32>
    %10 = arith.maximumf %8, %9 : vector<8x16xf32>
    %11 = arith.truncf %10 : vector<8x16xf32> to vector<8x16xbf16>
    %cst_10 = arith.constant dense<0.000000e+00> : vector<8x16xf32>
    %12 = tpu.matmul %11, %3, %cst_10 {dimension_numbers = #tpu.dot_dimension_numbers<[1], [0], [0], [1], [0, 0, 1, 1], [], []>} : vector<8x16xbf16>, vector<16x16xbf16>, vector<8x16xf32> -> vector<8x16xf32>
    %13 = vector.broadcast %4 : vector<1x16xf32> to vector<8x16xf32>
    %14 = arith.addf %12, %13 : vector<8x16xf32>
    %cst_11 = arith.constant 0.000000e+00 : f32
    %15 = vector.broadcast %cst_11 : f32 to vector<8x16xf32>
    %16 = arith.maximumf %14, %15 : vector<8x16xf32>
    %c0_12 = arith.constant 0 : index
    %c0_13 = arith.constant 0 : index
    %17 = vector.load %arg10[%c0_12, %c0_13] : memref<8x16xf32, #tpu.memory_space<vmem>>, vector<8x16xf32>
    tpu.vector_store %arg10[%c0_12, %c0_13], %16 {strides = array<i32>} : memref<8x16xf32, #tpu.memory_space<vmem>>, vector<8x16xf32>,
    %c0_14 = arith.constant 0 : index
    %c0_15 = arith.constant 0 : index
    %18 = vector.load %arg6[%c0_14, %c0_15] : memref<16x32xbf16, #tpu.memory_space<vmem>>, vector<16x32xbf16>
    %19 = arith.truncf %16 : vector<8x16xf32> to vector<8x16xbf16>
    %cst_16 = arith.constant dense<0.000000e+00> : vector<8x32xf32>
    %20 = tpu.matmul %19, %18, %cst_16 {dimension_numbers = #tpu.dot_dimension_numbers<[1], [0], [0], [1], [0, 0, 1, 1], [], []>} : vector<8x16xbf16>, vector<16x32xbf16>, vector<8x32xf32> -> vector<8x32xf32>
    %c0_17 = arith.constant 0 : index
    %c0_18 = arith.constant 0 : index
    %21 = vector.load %arg7[%c0_17, %c0_18] : memref<1x32xf32, #tpu.memory_space<vmem>>, vector<1x32xf32>
    %22 = vector.broadcast %21 : vector<1x32xf32> to vector<8x32xf32>
    %23 = arith.addf %20, %22 : vector<8x32xf32>
    %c0_19 = arith.constant 0 : index
    %c0_20 = arith.constant 0 : index
    %24 = vector.load %arg11[%c0_19, %c0_20] : memref<8x32xf32, #tpu.memory_space<vmem>>, vector<8x32xf32>
    tpu.vector_store %arg11[%c0_19, %c0_20], %23 {strides = array<i32>} : memref<8x32xf32, #tpu.memory_space<vmem>>, vector<8x32xf32>,
    %c0_21 = arith.constant 0 : index
    %c0_22 = arith.constant 0 : index
    %25 = vector.load %arg8[%c0_21, %c0_22] : memref<16x32xbf16, #tpu.memory_space<vmem>>, vector<16x32xbf16>
    %26 = arith.truncf %16 : vector<8x16xf32> to vector<8x16xbf16>
    %cst_23 = arith.constant dense<0.000000e+00> : vector<8x32xf32>
    %27 = tpu.matmul %26, %25, %cst_23 {dimension_numbers = #tpu.dot_dimension_numbers<[1], [0], [0], [1], [0, 0, 1, 1], [], []>} : vector<8x16xbf16>, vector<16x32xbf16>, vector<8x32xf32> -> vector<8x32xf32>
    %c0_24 = arith.constant 0 : index
    %c0_25 = arith.constant 0 : index
    %28 = vector.load %arg9[%c0_24, %c0_25] : memref<1x32xf32, #tpu.memory_space<vmem>>, vector<1x32xf32>
    %29 = vector.broadcast %28 : vector<1x32xf32> to vector<8x32xf32>
    %30 = arith.addf %27, %29 : vector<8x32xf32>
    %c0_26 = arith.constant 0 : index
    %c0_27 = arith.constant 0 : index
    %31 = vector.load %arg12[%c0_26, %c0_27] : memref<8x32xf32, #tpu.memory_space<vmem>>, vector<8x32xf32>
    tpu.vector_store %arg12[%c0_26, %c0_27], %30 {strides = array<i32>} : memref<8x32xf32, #tpu.memory_space<vmem>>, vector<8x32xf32>,
    return
  }
  func.func @transform_0(%arg0: i32) -> (i32, i32) {
    %c0_i32 = arith.constant 0 : i32
    %c0_i32_0 = arith.constant 0 : i32
    return %arg0, %c0_i32 : i32, i32
  }
  func.func @transform_1(%arg0: i32) -> (i32, i32) {
    %c0_i32 = arith.constant 0 : i32
    %c0_i32_0 = arith.constant 0 : i32
    %c0_i32_1 = arith.constant 0 : i32
    return %c0_i32, %c0_i32_0 : i32, i32
  }
  func.func @transform_2(%arg0: i32) -> (i32, i32) {
    %c0_i32 = arith.constant 0 : i32
    %c0_i32_0 = arith.constant 0 : i32
    %c0_i32_1 = arith.constant 0 : i32
    return %c0_i32, %c0_i32_0 : i32, i32
  }
  func.func @transform_3(%arg0: i32) -> (i32, i32) {
    %c0_i32 = arith.constant 0 : i32
    %c0_i32_0 = arith.constant 0 : i32
    %c0_i32_1 = arith.constant 0 : i32
    return %c0_i32, %c0_i32_0 : i32, i32
  }
  func.func @transform_4(%arg0: i32) -> (i32, i32) {
    %c0_i32 = arith.constant 0 : i32
    %c0_i32_0 = arith.constant 0 : i32
    %c0_i32_1 = arith.constant 0 : i32
    return %c0_i32, %c0_i32_0 : i32, i32
  }
  func.func @transform_5(%arg0: i32) -> (i32, i32) {
    %c0_i32 = arith.constant 0 : i32
    %c0_i32_0 = arith.constant 0 : i32
    %c0_i32_1 = arith.constant 0 : i32
    return %c0_i32, %c0_i32_0 : i32, i32
  }
  func.func @transform_6(%arg0: i32) -> (i32, i32) {
    %c0_i32 = arith.constant 0 : i32
    %c0_i32_0 = arith.constant 0 : i32
    %c0_i32_1 = arith.constant 0 : i32
    return %c0_i32, %c0_i32_0 : i32, i32
  }
  func.func @transform_7(%arg0: i32) -> (i32, i32) {
    %c0_i32 = arith.constant 0 : i32
    %c0_i32_0 = arith.constant 0 : i32
    %c0_i32_1 = arith.constant 0 : i32
    return %c0_i32, %c0_i32_0 : i32, i32
  }
  func.func @transform_8(%arg0: i32) -> (i32, i32) {
    %c0_i32 = arith.constant 0 : i32
    %c0_i32_0 = arith.constant 0 : i32
    %c0_i32_1 = arith.constant 0 : i32
    return %c0_i32, %c0_i32_0 : i32, i32
  }
  func.func @transform_9(%arg0: i32) -> (i32, i32) {
    %c0_i32 = arith.constant 0 : i32
    %c0_i32_0 = arith.constant 0 : i32
    return %arg0, %c0_i32 : i32, i32
  }
  func.func @transform_10(%arg0: i32) -> (i32, i32) {
    %c0_i32 = arith.constant 0 : i32
    %c0_i32_0 = arith.constant 0 : i32
    return %arg0, %c0_i32 : i32, i32
  }
  func.func @transform_11(%arg0: i32) -> (i32, i32) {
    %c0_i32 = arith.constant 0 : i32
    %c0_i32_0 = arith.constant 0 : i32
    return %arg0, %c0_i32 : i32, i32
  }
}

</mosaic_0001>

<bundles_post_ra>
// kernel: tpu_custom_call.1
= control target key start
LH: loop header
LB: loop body
LE: loop exit
PB: predicated region body
PF: predicated region fallthrough
CT: control target
= control target key end

     0   :  { %s1381_s0 = inlined_call_operand.vmem [shape: f32[16,8], index: 0, kind: input, shape index: {}]   ;;  %s1382_s1 = inlined_call_operand.hbm [shape: bf16[8,16], index: 1, kind: input, shape index: {}]   ;;  %s1383_s2 = inlined_call_operand.vmem [shape: f32[1,16], index: 2, kind: input, shape index: {}]   ;;  %s1384_s3 = inlined_call_operand.vmem [shape: bf16[16,16], index: 3, kind: input, shape index: {}]   ;;  %s1385_s4 = inlined_call_operand.vmem [shape: f32[1,16], index: 4, kind: input, shape index: {}]   ;;  %s1386_s5 = inlined_call_operand.vmem [shape: bf16[16,32], index: 5, kind: input, shape index: {}]   ;;  %s1387_s6 = inlined_call_operand.vmem [shape: f32[1,32], index: 6, kind: input, shape index: {}]   ;;  %s1388_s7 = inlined_call_operand.vmem [shape: bf16[16,32], index: 7, kind: input, shape index: {}]   ;;  %s1389_s8 = inlined_call_operand.vmem [shape: f32[1,32], index: 8, kind: input, shape index: {}]   ;;  %s1390_s9 = inlined_call_operand.hbm [shape: f32[16,16], index: 9, kind: output, shape index: {0}]   ;;  %s1391_s10 = inlined_call_operand.hbm [shape: f32[16,32], index: 10, kind: output, shape index: {1}]   ;;  %s1392_s11 = inlined_call_operand.hbm [shape: f32[16,32], index: 11, kind: output, shape index: {2}]  }
   0x1   :  { %1394 = sst [smem:[#allocation12_spill]] %s1381_s0 }
   0x2   :  { %1395 = sst [smem:[#allocation13_spill]] %s1382_s1 }
   0x3   :  { %1396 = sst [smem:[#allocation14_spill]] %s1383_s2 }
   0x4   :  { %1397 = sst [smem:[#allocation15_spill]] %s1384_s3 }
   0x5   :  { %1398 = sst [smem:[#allocation16_spill]] %s1385_s4 }
   0x6   :  { %17 = vsyncpa [#allocation3], 0 }
   0x7   :  { %18 = vsyncpa [#allocation4], 0 }
   0x8   :  { %20 = vsyncpa [#allocation4 + $0x1], 0 }
   0x9   :  { %21 = vsyncpa [#allocation7], 0 }
   0xa   :  { %23 = vsyncpa [#allocation7 + $0x1], 0  ;;  %s1174_s17 = smov 0   ;;  %s1176_s18 = smov 0  }
   0xb   :  { %s1178_s19 = smov 0   ;;  %s1180_s20 = smov 0  }
   0xc LB: > { %s1195_s21 = sadd.s32 4294967295, %s1106_s20   ;;  %s1393_s22 = sadd.s32 4294967294, %s1106_s20   ;;  %s1106_s20 = sphi %s1180_s20, %s1412_s20   ;;  %s1102_s19 = sphi %s1178_s19, %s1411_s19   ;;  %s1098_s18 = sphi %s1176_s18, %s1410_s18   ;;  %s1094_s17 = sphi %s1174_s17, %s1409_s17  }
   0xd   : > { %s1199_s23 = sadd.s32 1, %s1106_s20   ;;  %s230_s24 = sadd.s32 1, %s1102_s19 }
   0xe   : > { %s227_s25 = ssub.s32 %s1106_s20, %s1199_s23  ;;  %p240_p0 = scmp.ne.s32.totalorder %s1102_s19, %s1098_s18 }
   0xf   : > { %p228_p1 = scmp.eq.s32.totalorder %s227_s25, 0  ;;  %p241_p2 = scmp.eq.s32.totalorder %s1195_s21, 1 }
  0x10   : > { %p246_p3 = scmp.ne.s32.totalorder %s1098_s18, %s1094_s17  ;;  %p247_p4 = scmp.eq.s32.totalorder %s1393_s22, 1 }
  0x11   : > { %s1212_s26 = scalar_select %p228_p1, %s1102_s19, %s230_s24  }
  0x12   : > { %p1214_p5 = por %p241_p2, %p240_p0  ;;  %p1218_p6 = por %p247_p4, %p246_p3 }
  0x13   : > { %p835_p7 = scmp.ge.s32.totalorder %s1106_s20, 1  ;;  %p306_p8 = scmp.lt.s32.totalorder %s1106_s20, 3 }
  0x14   : > { %s1400_s28 = scalar_select %p1218_p6, 1, 0 }
  0x15   : > { %p919_p9 = scmp.eq.s32.totalorder %s1195_s21, 0  ;;  %p1225_p10 = pnand %p835_p7, %p306_p8 }
  0x16   : > { %s1108_s30 = smov [#allocation2]  }
  0x17   : > { %s319_s12 = sshll.u32 %s1108_s30, 4  ;;  %p905_p11 = pneg %p1225_p10  ;;  %s320_s12 = int_to_ptr.vmem [resolvable:$true] %s319_s12 }
  0x18   : > { %s971_s13 = scalar_lea.vmem %s320_s12, 64  ;;  %p979_p3 = scmp.lt.s32.totalorder %s320_s12, %s320_s12 }
  0x19   : > { %p906_p12 = pnand %p919_p9, %p905_p11  ;;  %p972_p0 = scmp.ne.s32.totalorder %s320_s12, %s971_s13 }
  0x1a   : > { %p980_p4 = scmp.lt.s32.totalorder %s971_s13, %s971_s13 }
  0x1b   : > { %p962_p13 = pneg %p906_p12 }
  0x1c   : > { %p981_p6 = por %p980_p4, %p979_p3 }
  0x1d   : > { %p974_p1 = pnand %p972_p0, %p962_p13 }
  0x1f   : > { %p975_p2 = pneg %p974_p1 }
  0x21   : > { %p982_p7 = pnand %p981_p6, %p975_p2 }
  0x23   : > { %985 = shalt.err (!%p982_p7)
}
  0x24   : > { %s1402_s1 = sld [smem:[#allocation13_spill]] }
  0x26   : > { %360 = sbr.rel (%p1225_p10) target bundleno = 683 (0x2ab), region = 56 }
  0x2a   : > { %908 = dma.hbm_to_vmem [thread:$0]  (!%p906_p12), %s1402_s1, 64, %s320_s12, [#allocation3]  }
  0x2b   : > { %1081 = dma.done.wait (%p919_p9), [#allocation3], 64  }
  0x2c   : > { %1083 = vsyncadd (%p919_p9), [#allocation3], 4294967232  ;;  %p409_p8 = scmp.lt.s32.totalorder %s1195_s21, 1  ;;  %v1109_v0 = vmov 0.0   ;;  %vm1110_vm0 = vmmov 0   ;;  %vm431_vm1 = vcmask 1043456  }
  0x2d   : > { %871 = vmatprep.subr.bf16.mxu0 %v1109_v0  ;;  %873 = vmatprep.mubr.msk.bf16.mxu0 %vm1110_vm0, %v1109_v0  ;;  %s1403_s0 = sld [smem:[#allocation12_spill]]  ;;  %v415_v1 = vld [vmem:[#allocation2] sm:$0xf]  ;;  %vm427_vm2 = vcmask 64512   ;;  %vm489_vm3 = vcmask 130048  }
  0x2e   : > { %s410_s16 = scalar_select %p409_p8, %s1195_s21, 1  ;;  %877 = vmatprep.subr.bf16.mxu1 %v1109_v0  ;;  %879 = vmatprep.mubr.msk.bf16.mxu1 %vm1110_vm0, %v1109_v0  ;;  %v433_v3 = vsel %vm431_vm1, %v415_v1, 0  ;;  %v958_v6 = vld [vmem:[%s1386_s5] sm:$0xff]  }
  0x2f   : > { %872 = vmatpush3.bf16.msra.mxu0 %v433_v3  ;;  %s1404_s3 = sld [smem:[#allocation15_spill]]  ;;  %v959_v13 = vld [vmem:[%s1388_s7] sm:$0xff]  }
  0x30   : > { %s843_s24 = sshll.u32 %s410_s16, 3  ;;  %883 = vmatprep.subr.bf16.mxu0 %v1109_v0  ;;  %s1405_s2 = sld [smem:[#allocation14_spill]] }
  0x31   : > { %s1406_s4 = sld [smem:[#allocation16_spill]]  ;;  %s1275_s16 = sshll.u32 %s1195_s21, 7 }
  0x32   : > { %s674_s29 = scalar_lea.hbm %s1390_s9, %s1275_s16 }
  0x33   : > { %s412_s30 = scalar_lea.vmem %s1403_s0, %s843_s24  ;;  %s1111_s0 = smov [#allocation5]  }
  0x34   : > { %v414_v2 = vld [vmem:[%s412_s30] sm:$0xff]  ;;  %s392_s30 = sand.u32 1, %s1098_s18   ;;  %s990_s1 = sshll.u32 %s1111_s0, 4  ;;  %s991_s1 = int_to_ptr.vmem [resolvable:$false] %s990_s1 }
  0x35   : > { %v420_v4 = vpack.c.bf16 %v414_v2, %v414_v2  ;;  %v957_v5 = vld [vmem:[%s1404_s3] sm:$0xff]   ;;  %s1268_s14 = sshll.u32 %s392_s30, 3  ;;  %s653_s13 = scalar_lea.sflag [#allocation4], %s392_s30 }
  0x36   : > { %878 = vmatpush3.bf16.msra.mxu1 %v957_v5  ;;  %v844_v7 = vld [vmem:[%s1405_s2] ss:$0 sm:$0xff]  ;;  %s394_s15 = scalar_lea.vmem [#allocation5], %s1268_s14  ;;  %s992_s2 = scalar_lea.vmem %s991_s1, 256 }
  0x37   : > { %874 = vmatmul.mubr.msk.bf16.vlgmr.msra.gmra.mxu0 %vm427_vm2, %v420_v4  ;;  %889 = vmatprep.subr.bf16.mxu1 %v1109_v0  ;;  %v846_v16 = vld [vmem:[%s1406_s4] ss:$0 sm:$0xff]  ;;  %s676_s12 = sshll.u32 %s394_s15, 4  ;;  %s677_s12 = int_to_ptr.vmem [resolvable:$true] %s676_s12 }
  0x38   : > { %885 = vmatprep.mubr.msk.bf16.mxu0 %vm1110_vm0, %v1109_v0  ;;  %884 = vmatpush3.bf16.msra.mxu0 %v958_v6  ;;  %s986_s22 = scalar_lea.vmem %s677_s12, 128  ;;  %p993_p11 = scmp.lt.s32.totalorder %s677_s12, %s991_s1 }
  0x39   : > { %p987_p6 = scmp.ne.s32.totalorder %s677_s12, %s986_s22  ;;  %p994_p12 = scmp.lt.s32.totalorder %s992_s2, %s986_s22 }
  0x3b   : > { %p988_p9 = pnand %p987_p6, %p1214_p5  ;;  %p995_p13 = por %p994_p12, %p993_p11 }
  0x3d   : > { %p989_p10 = pneg %p988_p9 }
  0x3f   : > { %p996_p0 = pnand %p995_p13, %p989_p10 }
  0xf7   : > { %v469_v8 = vpop.f32.mrf.mxu0 }
  0xf8   : > { %v470_v9 = vadd.f32 %v844_v7, %v469_v8 }
  0xf9   : > { %v875_v10 = vpop.f32.mrf.mxu0 }
  0xfa   : > { %v475_v11 = vmax.f32 %v470_v9, 0.0 }
  0xfb   : > { %v472_v12 = vpop.f32.mrf.mxu0 }
  0xfc   : > { %v476_v14 = vpack.c.bf16 %v475_v11, %v475_v11 }
  0xfd   : > { %v876_v15 = vpop.f32.mrf.mxu0 }
  0xfe   : > { %880 = vmatmul.mubr.msk.bf16.vlgmr.msra.gmra.mxu1 %vm489_vm3, %v476_v14 }
  0xff   : > { %890 = vmatpush3.bf16.msra.mxu1 %v959_v13  ;;  %891 = vmatprep.mubr.msk.bf16.mxu1 %vm1110_vm0, %v1109_v0 }
 0x1be   : > { %v527_v17 = vpop.f32.mrf.mxu1 }
 0x1bf   : > { %v528_v18 = vadd.f32 %v846_v16, %v527_v17 }
 0x1c0   : > { %v881_v19 = vpop.f32.mrf.mxu1 }
 0x1c1   : > { %v533_v20 = vmax.f32 %v528_v18, 0.0 }
 0x1c2   : > { %v530_v21 = vpop.f32.mrf.mxu1 }
 0x1c3   : > { %v537_v22 = vpack.c.bf16 %v533_v20, %v533_v20  ;;  %534 = vst.msk [vmem:[%s394_s15] sm:$0xff] %vm489_vm3, %v533_v20 }
 0x1c4   : > { %v882_v23 = vpop.f32.mrf.mxu1 }
 0x1c5   : > { %886 = vmatmul.mubr.msk.bf16.vlgmr.msra.gmra.mxu0 %vm489_vm3, %v537_v22  ;;  %892 = vmatmul.mubr.msk.bf16.vlgmr.msra.gmra.mxu1 %vm489_vm3, %v537_v22 }
 0x1c6   : > { %999 = shalt.err (!%p996_p0)
}
 0x1c7   : > { %s1000_s3 = scalar_lea.hbm %s674_s29, 128  ;;  %s1004_s24 = scalar_lea.hbm %s1390_s9, 256 }
 0x1c8   : > { %p1001_p1 = scmp.ne.s32.totalorder %s674_s29, %s1000_s3  ;;  %p1005_p4 = scmp.lt.s32.totalorder %s674_s29, %s1390_s9 }
 0x1c9   : > { %p1006_p7 = scmp.lt.s32.totalorder %s1004_s24, %s1000_s3 }
 0x1ca   : > { %p1002_p2 = pnand %p1001_p1, %p1214_p5 }
 0x1cb   : > { %p1007_p8 = por %p1006_p7, %p1005_p4 }
 0x1cc   : > { %p1003_p3 = pneg %p1002_p2 }
 0x1ce   : > { %p1008_p6 = pnand %p1007_p8, %p1003_p3 }
 0x1d0   : > { %1011 = shalt.err (!%p1008_p6)
}
 0x1d1   : > { %899 = dma.vmem_to_hbm [thread:$0]  (%p1214_p5), %s677_s12, 128, %s674_s29, %s653_s13   ;;  %v849_v24 = vld [vmem:[%s1387_s6] ss:$0 sm:$0xff]  ;;  %vm594_vm4 = vcmask 261120  }
 0x1d2   : > { %s657_s0 = sand.u32 1, %s1195_s21   ;;  %v852_v25 = vld [vmem:[%s1389_s8] ss:$0 sm:$0xff]  ;;  %s401_s3 = scalar_lea.vmem [#allocation6], %s1268_s14 }
 0x1d3   : > { %s689_s30 = sshll.u32 %s401_s3, 4  ;;  %s408_s15 = scalar_lea.vmem [#allocation8], %s1268_s14  ;;  %s1308_s30 = int_to_ptr.vmem [resolvable:$true] %s689_s30 }
 0x1d4   : > { %s702_s24 = sshll.u32 %s408_s15, 4  ;;  %s1306_s12 = scalar_lea.hbm %s1391_s10, %s1275_s16  ;;  %s1316_s24 = int_to_ptr.vmem [resolvable:$true] %s702_s24 }
 0x1d5   : > { %s1314_s25 = scalar_lea.hbm %s1392_s11, %s1275_s16  ;;  %s1318_s1 = scalar_lea.sflag [#allocation7], %s657_s0 }
 0x1d6   : > { %s1012_s2 = scalar_lea.vmem %s1308_s30, 128  ;;  %s1112_s22 = smov [#allocation6]  }
 0x1d7   : > { %p1013_p9 = scmp.ne.s32.totalorder %s1308_s30, %s1012_s2  ;;  %s1016_s4 = sshll.u32 %s1112_s22, 4  ;;  %s1017_s4 = int_to_ptr.vmem [resolvable:$false] %s1016_s4 }
 0x1d8   : > { %s1018_s21 = scalar_lea.vmem %s1017_s4, 256  ;;  %p1019_p12 = scmp.lt.s32.totalorder %s1308_s30, %s1017_s4 }
 0x1d9   : > { %p1014_p10 = pnand %p1013_p9, %p1214_p5  ;;  %p1020_p13 = scmp.lt.s32.totalorder %s1018_s21, %s1012_s2 }
 0x1db   : > { %p1015_p11 = pneg %p1014_p10  ;;  %p1021_p0 = por %p1020_p13, %p1019_p12 }
 0x1dd   : > { %p1022_p1 = pnand %p1021_p0, %p1015_p11 }
 0x285   : > { %v588_v26 = vpop.f32.mrf.mxu0  ;;  %v645_v27 = vpop.f32.mrf.mxu1 }
 0x286   : > { %v589_v28 = vadd.f32 %v849_v24, %v588_v26  ;;  %v646_v29 = vadd.f32 %v852_v25, %v645_v27 }
 0x287   : > { %v887_v30 = vpop.f32.mrf.mxu0  ;;  %v893_v31 = vpop.f32.mrf.mxu1 }
 0x288   : > { %595 = vst.msk [vmem:[%s401_s3] sm:$0xff] %vm594_vm4, %v589_v28  ;;  %651 = vst.msk [vmem:[%s408_s15] sm:$0xff] %vm594_vm4, %v646_v29 }
 0x289   : > { %v591_v32 = vpop.f32.mrf.mxu0  ;;  %v648_v33 = vpop.f32.mrf.mxu1 }
 0x28a   : > { %1025 = shalt.err (!%p1022_p1)
}
 0x28b   : > { %s1026_s16 = scalar_lea.hbm %s1306_s12, 128  ;;  %s1030_s15 = scalar_lea.hbm %s1391_s10, 256 }
 0x28c   : > { %p1027_p2 = scmp.ne.s32.totalorder %s1306_s12, %s1026_s16  ;;  %p1031_p7 = scmp.lt.s32.totalorder %s1306_s12, %s1391_s10 }
 0x28d   : > { %p1032_p8 = scmp.lt.s32.totalorder %s1030_s15, %s1026_s16 }
 0x28e   : > { %p1028_p3 = pnand %p1027_p2, %p1214_p5 }
 0x28f   : > { %p1033_p6 = por %p1032_p8, %p1031_p7 }
 0x290   : > { %p1029_p4 = pneg %p1028_p3 }
 0x292   : > { %p1034_p9 = pnand %p1033_p6, %p1029_p4 }
 0x294   : > { %1037 = shalt.err (!%p1034_p9)
}
 0x295   : > { %900 = dma.vmem_to_hbm [thread:$0]  (%p1214_p5), %s1308_s30, 128, %s1306_s12, %s1318_s1  }
 0x296   : > { %s1038_s14 = scalar_lea.vmem %s1316_s24, 128  ;;  %s1113_s2 = smov [#allocation8]  }
 0x297   : > { %p1039_p10 = scmp.ne.s32.totalorder %s1316_s24, %s1038_s14  ;;  %s1042_s22 = sshll.u32 %s1113_s2, 4  ;;  %s1043_s22 = int_to_ptr.vmem [resolvable:$false] %s1042_s22 }
 0x298   : > { %s1044_s4 = scalar_lea.vmem %s1043_s22, 256  ;;  %p1045_p13 = scmp.lt.s32.totalorder %s1316_s24, %s1043_s22 }
 0x299   : > { %p1040_p11 = pnand %p1039_p10, %p1214_p5  ;;  %p1046_p0 = scmp.lt.s32.totalorder %s1044_s4, %s1038_s14 }
 0x29b   : > { %p1041_p12 = pneg %p1040_p11  ;;  %p1047_p1 = por %p1046_p0, %p1045_p13 }
 0x29d   : > { %p1048_p2 = pnand %p1047_p1, %p1041_p12 }
 0x29f   : > { %1051 = shalt.err (!%p1048_p2)
}
 0x2a0   : > { %s1052_s21 = scalar_lea.hbm %s1314_s25, 128  ;;  %s1056_s16 = scalar_lea.hbm %s1392_s11, 256 }
 0x2a1   : > { %p1053_p3 = scmp.ne.s32.totalorder %s1314_s25, %s1052_s21  ;;  %p1057_p8 = scmp.lt.s32.totalorder %s1314_s25, %s1392_s11 }
 0x2a2   : > { %p1058_p6 = scmp.lt.s32.totalorder %s1056_s16, %s1052_s21 }
 0x2a3   : > { %p1054_p4 = pnand %p1053_p3, %p1214_p5 }
 0x2a4   : > { %p1059_p9 = por %p1058_p6, %p1057_p8 }
 0x2a5   : > { %p1055_p7 = pneg %p1054_p4 }
 0x2a7   : > { %p1060_p10 = pnand %p1059_p9, %p1055_p7 }
 0x2a9   : > { %1063 = shalt.err (!%p1060_p10)
}
 0x2aa   : > { %901 = dma.vmem_to_hbm [thread:$0]  (%p1214_p5), %s1316_s24, 128, %s1314_s25, %s1318_s1   ;;  %v888_v34 = vpop.f32.mrf.mxu0  ;;  %v894_v35 = vpop.f32.mrf.mxu1 }
 0x2ab PF: > { %p921_p11 = scmp.ge.s32.totalorder %s1106_s20, 2  ;;  %s714_s15 = sand.u32 1, %s1094_s17  }
 0x2ac   : > { %p1407_p12 = scmp.ne.s32.totalorder %s1400_s28, 0  ;;  %s715_s29 = scalar_lea.sflag [#allocation4], %s714_s15 }
 0x2ae   : > { %p910_p13 = pnand %p921_p11, %p1407_p12 }
 0x2b0   : > { %p911_p0 = pneg %p910_p13 }
 0x2b2   : > { %1085 = dma.done.wait (%p911_p0), %s715_s29, 128  }
 0x2b3   : > { %1087 = vsyncadd (%p911_p0), %s715_s29, 4294967168  ;;  %s1408_s27 = sadd.s32 4294967294, %s1106_s20  }
 0x2b4   : > { %s723_s13 = sand.u32 1, %s1408_s27  }
 0x2b5   : > { %s724_s14 = scalar_lea.sflag [#allocation7], %s723_s13 }
 0x2b6   : > { %1089 = dma.done.wait (%p911_p0), %s724_s14, 256  }
 0x2b7   : > { %1091 = vsyncadd (%p911_p0), %s724_s14, 4294967040  ;;  %p26_p5 = scmp.ge.s32.totalorder %s1199_s23, 4   ;;  %s1409_s17 = smov %s1098_s18 }
 0x2b8   : > { %s1410_s18 = smov %s1102_s19  ;;  %s1411_s19 = smov %s1212_s26 }
 0x2b9   : > { %s1412_s20 = smov %s1199_s23  ;;  %28 = sbr.rel (!%p26_p5) target bundleno = 12 (0xc), region = 128 }
 0x2be   :  { %738 = vsyncpa [#allocation3], 1 }
 0x2bf   :  { %740 = vsyncpa [#allocation3 + $0x1], 1 }
 0x2c0   :  { %741 = vsyncpa [#allocation4], 1 }
 0x2c1   :  { %743 = vsyncpa [#allocation4 + $0x1], 1 }
 0x2c2   :  { %744 = vsyncpa [#allocation7], 1 }
 0x2c3   :  { %746 = vsyncpa [#allocation7 + $0x1], 1 }

</bundles_post_ra>
